<compile_context>
chip_gen: v7x
topology: tpu7x:2x2x1
jax: 0.10.0
libtpu: 0.0.40
codegen_flags: <defaults>
</compile_context>

<pallas_src>
import functools

import jax
import jax.numpy as jnp
from jax.experimental import pallas as pl
from jax.experimental.pallas import tpu as pltpu

LN_EPS = 1e-5


def _round_up(x, m):
    return (x + m - 1) // m * m


def _layernorm(x, gamma, beta):
    # Single-pass LayerNorm: the two cross-lane reductions are independent
    # (var = E[x^2] - mean^2), biased variance, eps inside the rsqrt.
    inv_f = 1.0 / x.shape[-1]
    s1 = jnp.sum(x, axis=-1, keepdims=True)
    s2 = jnp.sum(x * x, axis=-1, keepdims=True)
    mean = s1 * inv_f
    var = jnp.maximum(s2 * inv_f - mean * mean, 0.0)
    inv = jax.lax.rsqrt(var + LN_EPS)
    return (x - mean) * inv * gamma + beta


def _actor_kernel(state_ref, wp_ref, vp_ref, out_ref, *, dims, use_bf16_matmul):
    state_size, fc1, fc2, act = dims
    off1 = 0
    off2 = off1 + _round_up(state_size, 8)
    off3 = off2 + _round_up(fc1, 8)

    def mm(a, w):
        if use_bf16_matmul:
            a = a.astype(jnp.bfloat16)
            w = w.astype(jnp.bfloat16)
        return jnp.dot(a, w, preferred_element_type=jnp.float32)

    x = state_ref[...].astype(jnp.float32)

    # Static slices of the resident packed parameter buffers.
    # (Row offsets are 8-aligned so slices stay sublane-tile aligned.)
    w1 = wp_ref[off1:off1 + state_size, 0:fc1]
    w2 = wp_ref[off2:off2 + fc1, 0:fc2]
    w3 = wp_ref[off3:off3 + fc2, 0:act]

    v = vp_ref[...]                       # (16, Fmax): one load, then slice
    b1, g1, be1 = v[0:1, 0:fc1], v[1:2, 0:fc1], v[2:3, 0:fc1]
    b2, g2, be2 = v[3:4, 0:fc2], v[4:5, 0:fc2], v[5:6, 0:fc2]
    b3, g3, be3 = v[6:7, 0:act], v[7:8, 0:act], v[8:9, 0:act]

    # fc1 -> relu -> layernorm
    h = _layernorm(jnp.maximum(mm(x, w1) + b1, 0.0), g1, be1)
    # fc2 -> relu -> layernorm
    h = _layernorm(jnp.maximum(mm(h, w2) + b2, 0.0), g2, be2)
    # fc3 -> tanh -> layernorm
    h = _layernorm(jnp.tanh(mm(h, w3) + b3), g3, be3)

    out_ref[...] = h.astype(out_ref.dtype)


def pack_params(p):
    """Pack the 12 parameter arrays into two contiguous f32 buffers.

    Returns (w_packed, v_packed, dims):
      w_packed : (R, Fmax)  the three weight matrices zero-padded and stacked
                 along the sublane axis at 8-aligned row offsets,
      v_packed : (16, Fmax) rows 0..8 = b1,g1,be1,b2,g2,be2,b3,g3,be3
                 (zero-padded to 16 rows / Fmax lanes),
      dims     : (state_size, fc1_units, fc2_units, action_size).
    """
    state_size, fc1 = p["w1"].shape
    fc2 = p["w2"].shape[1]
    act = p["w3"].shape[1]
    fmax = max(fc1, fc2, act)

    def pad_to(a, rows, cols):
        a = a.astype(jnp.float32)
        return jnp.pad(a, ((0, rows - a.shape[0]), (0, cols - a.shape[1])))

    w_packed = jnp.concatenate(
        [pad_to(p["w1"], _round_up(state_size, 8), fmax),
         pad_to(p["w2"], _round_up(fc1, 8), fmax),
         pad_to(p["w3"], _round_up(fc2, 8), fmax)], axis=0)

    v_rows = [p["b1"], p["g1"], p["be1"],
              p["b2"], p["g2"], p["be2"],
              p["b3"], p["g3"], p["be3"]]
    v_packed = jnp.concatenate([pad_to(v, 1, fmax) for v in v_rows], axis=0)
    v_packed = jnp.pad(v_packed, ((0, 16 - v_packed.shape[0]), (0, 0)))

    return w_packed, v_packed, (state_size, fc1, fc2, act)


def actor_forward(state, w_packed, v_packed, dims, *, tile_b=256,
                  use_bf16_matmul=False):
    """Fused Actor forward.  state: (B, state_size) f32 -> (B, action_size)."""
    state_size, fc1, fc2, act = dims
    B = state.shape[0]

    # Batch tile: multiple of 8 sublanes; cap keeps double-buffered
    # activations far under the 32 MiB scoped-VMEM default (v7x total VMEM is
    # 64 MiB vs 128 MiB on v5e/v6e -- we are tiny either way).
    tile_b = max(8, min(_round_up(tile_b, 8), _round_up(B, 8)))
    b_pad = _round_up(B, tile_b)
    if b_pad != B:
        state = jnp.pad(state, ((0, b_pad - B), (0, 0)))

    kernel = functools.partial(_actor_kernel, dims=dims,
                               use_bf16_matmul=use_bf16_matmul)

    flops = 2 * b_pad * (state_size * fc1 + fc1 * fc2 + fc2 * act)
    transcendentals = b_pad * (act + 3)        # tanh per action + 3 rsqrt/row
    bytes_accessed = 4 * (b_pad * (state_size + act)
                          + int(w_packed.size) + int(v_packed.size))

    out = pl.pallas_call(
        kernel,
        out_shape=jax.ShapeDtypeStruct((b_pad, act), jnp.float32),
        grid=(b_pad // tile_b,),
        in_specs=[
            pl.BlockSpec((tile_b, state_size), lambda i: (i, 0)),
            # Packed parameters: full block, constant index_map -> resident
            # in VMEM across every grid step (fetched once).
            pl.BlockSpec(w_packed.shape, lambda i: (0, 0)),
            pl.BlockSpec(v_packed.shape, lambda i: (0, 0)),
        ],
        out_specs=pl.BlockSpec((tile_b, act), lambda i: (i, 0)),
        compiler_params=pltpu.CompilerParams(
            dimension_semantics=("parallel",)),
        cost_estimate=pl.CostEstimate(
            flops=flops, transcendentals=transcendentals,
            bytes_accessed=bytes_accessed),
    )(state, w_packed, v_packed)

    return out[:B]


def init_params(key, state_size, action_size, fc1_units, fc2_units):
    """Deterministic synthetic init mirroring the module's reset_parameters.

    Note: hidden_init in the reference uses weight.size()[0] (= out_features
    for PyTorch's (out,in) weight layout), hence the 1/sqrt(fcN_units) limits.
    Linear biases keep PyTorch's default U(-1/sqrt(in_features), ...).
    """
    ks = jax.random.split(key, 6)

    def unif(k, shape, lim):
        return jax.random.uniform(k, shape, jnp.float32, minval=-lim, maxval=lim)

    lim1 = 1.0 / jnp.sqrt(jnp.float32(fc1_units))
    lim2 = 1.0 / jnp.sqrt(jnp.float32(fc2_units))

    return {
        # weights stored (in, out) = PyTorch weight.T
        "w1": unif(ks[0], (state_size, fc1_units), lim1),
        "b1": unif(ks[1], (1, fc1_units), 1.0 / jnp.sqrt(jnp.float32(state_size))),
        "w2": unif(ks[2], (fc1_units, fc2_units), lim2),
        "b2": unif(ks[3], (1, fc2_units), 1.0 / jnp.sqrt(jnp.float32(fc1_units))),
        "w3": unif(ks[4], (fc2_units, action_size), 3e-3),
        "b3": unif(ks[5], (1, action_size), 1.0 / jnp.sqrt(jnp.float32(fc2_units))),
        # LayerNorm affine params (PyTorch defaults: gamma=1, beta=0)
        "g1": jnp.ones((1, fc1_units), jnp.float32),
        "be1": jnp.zeros((1, fc1_units), jnp.float32),
        "g2": jnp.ones((1, fc2_units), jnp.float32),
        "be2": jnp.zeros((1, fc2_units), jnp.float32),
        "g3": jnp.ones((1, action_size), jnp.float32),
        "be3": jnp.zeros((1, action_size), jnp.float32),
    }


def actor_reference(state, p, bf16_matmul=False):
    """Pure-JAX reference (two-pass LayerNorm, like the PyTorch module)."""
    def mm(a, w):
        if bf16_matmul:
            a = a.astype(jnp.bfloat16)
            w = w.astype(jnp.bfloat16)
        return jnp.dot(a, w, preferred_element_type=jnp.float32)

    def ln(x, g, b):
        m = jnp.mean(x, axis=-1, keepdims=True)
        v = jnp.mean((x - m) ** 2, axis=-1, keepdims=True)
        return (x - m) / jnp.sqrt(v + LN_EPS) * g + b

    x = jnp.maximum(mm(state, p["w1"]) + p["b1"], 0.0)
    x = ln(x, p["g1"], p["be1"])
    x = jnp.maximum(mm(x, p["w2"]) + p["b2"], 0.0)
    x = ln(x, p["g2"], p["be2"])
    x = jnp.tanh(mm(x, p["w3"]) + p["b3"])
    x = ln(x, p["g3"], p["be3"])
    return x


if __name__ == "__main__":
    # Small shapes consistent with the Tennis collab-compet env.
    batch, state_size, action_size = 8, 24, 2
    fc1_units, fc2_units = 64, 32

    key = jax.random.PRNGKey(0)
    k_state, k_params = jax.random.split(key)

    params = init_params(k_params, state_size, action_size, fc1_units, fc2_units)
    state = jax.random.normal(k_state, (batch, state_size), jnp.float32)

    w_packed, v_packed, dims = pack_params(params)

    # f32 matmul path: strict parity with the pure-JAX / PyTorch semantics.
    out = actor_forward(state, w_packed, v_packed, dims)
    out = jax.block_until_ready(out)
    ref = actor_reference(state, params)
    assert out.shape == (batch, action_size)
    assert jnp.allclose(out, ref, atol=1e-5, rtol=1e-4), "f32 mismatch vs reference"

    # bf16-operand matmul path (MXU-throughput lever on v6e/v7x): compare
    # against a reference with the same operand rounding, looser tolerance.
    out_bf16 = actor_forward(state, w_packed, v_packed, dims,
                             use_bf16_matmul=True)
    out_bf16 = jax.block_until_ready(out_bf16)
    ref_bf16 = actor_reference(state, params, bf16_matmul=True)
    assert jnp.allclose(out_bf16, ref_bf16, atol=1e-2, rtol=1e-2), "bf16 mismatch"

    print("KERNEL_OK")
</pallas_src>

<mosaic_0001>
module attributes {stable_mosaic.version = 11 : i64} {
  func.func @_actor_kernel(%arg0: i32, %arg1: memref<8x24xf32, #tpu.memory_space<vmem>>, %arg2: memref<120x64xf32, #tpu.memory_space<vmem>>, %arg3: memref<16x64xf32, #tpu.memory_space<vmem>>, %arg4: memref<8x2xf32, #tpu.memory_space<vmem>>) attributes {dimension_semantics = [#tpu.dimension_semantics<parallel>], iteration_bounds = array<i64: 1>, scalar_prefetch = 0 : i64, scratch_operands = 0 : i64, tpu.core_type = #tpu.core_type<tc>, window_params = [{transform_indices = @transform_0, window_bounds = array<i64: 8, 24>}, {pipeline_mode = #tpu.pipeline_mode<synchronous>, transform_indices = @transform_1, window_bounds = array<i64: 120, 64>}, {pipeline_mode = #tpu.pipeline_mode<synchronous>, transform_indices = @transform_2, window_bounds = array<i64: 16, 64>}, {transform_indices = @transform_3, window_bounds = array<i64: 8, 2>}]} {
    %c0 = arith.constant 0 : index
    %c0_0 = arith.constant 0 : index
    %0 = vector.load %arg1[%c0, %c0_0] : memref<8x24xf32, #tpu.memory_space<vmem>>, vector<8x24xf32>
    %c0_1 = arith.constant 0 : index
    %c0_2 = arith.constant 0 : index
    %1 = vector.load %arg2[%c0_1, %c0_2] : memref<120x64xf32, #tpu.memory_space<vmem>>, vector<24x64xf32>
    %c24 = arith.constant 24 : index
    %c0_3 = arith.constant 0 : index
    %2 = vector.load %arg2[%c24, %c0_3] : memref<120x64xf32, #tpu.memory_space<vmem>>, vector<64x32xf32>
    %c88 = arith.constant 88 : index
    %c0_4 = arith.constant 0 : index
    %3 = vector.load %arg2[%c88, %c0_4] : memref<120x64xf32, #tpu.memory_space<vmem>>, vector<32x2xf32>
    %c0_5 = arith.constant 0 : index
    %c0_6 = arith.constant 0 : index
    %4 = vector.load %arg3[%c0_5, %c0_6] : memref<16x64xf32, #tpu.memory_space<vmem>>, vector<16x64xf32>
    %5 = vector.extract_strided_slice %4 {offsets = [0, 0], sizes = [1, 64], strides = [1, 1]} : vector<16x64xf32> to vector<1x64xf32>
    %6 = vector.extract_strided_slice %4 {offsets = [1, 0], sizes = [1, 64], strides = [1, 1]} : vector<16x64xf32> to vector<1x64xf32>
    %7 = vector.extract_strided_slice %4 {offsets = [2, 0], sizes = [1, 64], strides = [1, 1]} : vector<16x64xf32> to vector<1x64xf32>
    %8 = vector.extract_strided_slice %4 {offsets = [3, 0], sizes = [1, 32], strides = [1, 1]} : vector<16x64xf32> to vector<1x32xf32>
    %9 = vector.extract_strided_slice %4 {offsets = [4, 0], sizes = [1, 32], strides = [1, 1]} : vector<16x64xf32> to vector<1x32xf32>
    %10 = vector.extract_strided_slice %4 {offsets = [5, 0], sizes = [1, 32], strides = [1, 1]} : vector<16x64xf32> to vector<1x32xf32>
    %11 = vector.extract_strided_slice %4 {offsets = [6, 0], sizes = [1, 2], strides = [1, 1]} : vector<16x64xf32> to vector<1x2xf32>
    %12 = vector.extract_strided_slice %4 {offsets = [7, 0], sizes = [1, 2], strides = [1, 1]} : vector<16x64xf32> to vector<1x2xf32>
    %13 = vector.extract_strided_slice %4 {offsets = [8, 0], sizes = [1, 2], strides = [1, 1]} : vector<16x64xf32> to vector<1x2xf32>
    %cst = arith.constant dense<0.000000e+00> : vector<8x64xf32>
    %14 = tpu.matmul %0, %1, %cst {dimension_numbers = #tpu.dot_dimension_numbers<[1], [0], [0], [1], [0, 0, 1, 1], [], []>} : vector<8x24xf32>, vector<24x64xf32>, vector<8x64xf32> -> vector<8x64xf32>
    %15 = vector.broadcast %5 : vector<1x64xf32> to vector<8x64xf32>
    %16 = arith.addf %14, %15 : vector<8x64xf32>
    %cst_7 = arith.constant 0.000000e+00 : f32
    %17 = vector.broadcast %cst_7 : f32 to vector<8x64xf32>
    %18 = arith.maximumf %16, %17 : vector<8x64xf32>
    %cst_8 = arith.constant dense<0.000000e+00> : vector<8xf32>
    %19 = vector.multi_reduction <add>, %18, %cst_8 [1] : vector<8x64xf32> to vector<8xf32>
    %20 = vector.shape_cast %19 : vector<8xf32> to vector<8x1xf32>
    %21 = arith.mulf %18, %18 : vector<8x64xf32>
    %cst_9 = arith.constant dense<0.000000e+00> : vector<8xf32>
    %22 = vector.multi_reduction <add>, %21, %cst_9 [1] : vector<8x64xf32> to vector<8xf32>
    %23 = vector.shape_cast %22 : vector<8xf32> to vector<8x1xf32>
    %cst_10 = arith.constant 1.562500e-02 : f32
    %24 = vector.broadcast %cst_10 : f32 to vector<8x1xf32>
    %25 = arith.mulf %20, %24 : vector<8x1xf32>
    %cst_11 = arith.constant 1.562500e-02 : f32
    %26 = vector.broadcast %cst_11 : f32 to vector<8x1xf32>
    %27 = arith.mulf %23, %26 : vector<8x1xf32>
    %28 = arith.mulf %25, %25 : vector<8x1xf32>
    %29 = arith.subf %27, %28 : vector<8x1xf32>
    %cst_12 = arith.constant 0.000000e+00 : f32
    %30 = vector.broadcast %cst_12 : f32 to vector<8x1xf32>
    %31 = arith.maximumf %29, %30 : vector<8x1xf32>
    %cst_13 = arith.constant 9.99999974E-6 : f32
    %32 = vector.broadcast %cst_13 : f32 to vector<8x1xf32>
    %33 = arith.addf %31, %32 : vector<8x1xf32>
    %34 = math.rsqrt %33 : vector<8x1xf32>
    %35 = vector.broadcast %25 : vector<8x1xf32> to vector<8x64xf32>
    %36 = arith.subf %18, %35 : vector<8x64xf32>
    %37 = vector.broadcast %34 : vector<8x1xf32> to vector<8x64xf32>
    %38 = arith.mulf %36, %37 : vector<8x64xf32>
    %39 = vector.broadcast %6 : vector<1x64xf32> to vector<8x64xf32>
    %40 = arith.mulf %38, %39 : vector<8x64xf32>
    %41 = vector.broadcast %7 : vector<1x64xf32> to vector<8x64xf32>
    %42 = arith.addf %40, %41 : vector<8x64xf32>
    %cst_14 = arith.constant dense<0.000000e+00> : vector<8x32xf32>
    %43 = tpu.matmul %42, %2, %cst_14 {dimension_numbers = #tpu.dot_dimension_numbers<[1], [0], [0], [1], [0, 0, 1, 1], [], []>} : vector<8x64xf32>, vector<64x32xf32>, vector<8x32xf32> -> vector<8x32xf32>
    %44 = vector.broadcast %8 : vector<1x32xf32> to vector<8x32xf32>
    %45 = arith.addf %43, %44 : vector<8x32xf32>
    %cst_15 = arith.constant 0.000000e+00 : f32
    %46 = vector.broadcast %cst_15 : f32 to vector<8x32xf32>
    %47 = arith.maximumf %45, %46 : vector<8x32xf32>
    %cst_16 = arith.constant dense<0.000000e+00> : vector<8xf32>
    %48 = vector.multi_reduction <add>, %47, %cst_16 [1] : vector<8x32xf32> to vector<8xf32>
    %49 = vector.shape_cast %48 : vector<8xf32> to vector<8x1xf32>
    %50 = arith.mulf %47, %47 : vector<8x32xf32>
    %cst_17 = arith.constant dense<0.000000e+00> : vector<8xf32>
    %51 = vector.multi_reduction <add>, %50, %cst_17 [1] : vector<8x32xf32> to vector<8xf32>
    %52 = vector.shape_cast %51 : vector<8xf32> to vector<8x1xf32>
    %cst_18 = arith.constant 3.125000e-02 : f32
    %53 = vector.broadcast %cst_18 : f32 to vector<8x1xf32>
    %54 = arith.mulf %49, %53 : vector<8x1xf32>
    %cst_19 = arith.constant 3.125000e-02 : f32
    %55 = vector.broadcast %cst_19 : f32 to vector<8x1xf32>
    %56 = arith.mulf %52, %55 : vector<8x1xf32>
    %57 = arith.mulf %54, %54 : vector<8x1xf32>
    %58 = arith.subf %56, %57 : vector<8x1xf32>
    %cst_20 = arith.constant 0.000000e+00 : f32
    %59 = vector.broadcast %cst_20 : f32 to vector<8x1xf32>
    %60 = arith.maximumf %58, %59 : vector<8x1xf32>
    %cst_21 = arith.constant 9.99999974E-6 : f32
    %61 = vector.broadcast %cst_21 : f32 to vector<8x1xf32>
    %62 = arith.addf %60, %61 : vector<8x1xf32>
    %63 = math.rsqrt %62 : vector<8x1xf32>
    %64 = vector.broadcast %54 : vector<8x1xf32> to vector<8x32xf32>
    %65 = arith.subf %47, %64 : vector<8x32xf32>
    %66 = vector.broadcast %63 : vector<8x1xf32> to vector<8x32xf32>
    %67 = arith.mulf %65, %66 : vector<8x32xf32>
    %68 = vector.broadcast %9 : vector<1x32xf32> to vector<8x32xf32>
    %69 = arith.mulf %67, %68 : vector<8x32xf32>
    %70 = vector.broadcast %10 : vector<1x32xf32> to vector<8x32xf32>
    %71 = arith.addf %69, %70 : vector<8x32xf32>
    %cst_22 = arith.constant dense<0.000000e+00> : vector<8x2xf32>
    %72 = tpu.matmul %71, %3, %cst_22 {dimension_numbers = #tpu.dot_dimension_numbers<[1], [0], [0], [1], [0, 0, 1, 1], [], []>} : vector<8x32xf32>, vector<32x2xf32>, vector<8x2xf32> -> vector<8x2xf32>
    %73 = vector.broadcast %11 : vector<1x2xf32> to vector<8x2xf32>
    %74 = arith.addf %72, %73 : vector<8x2xf32>
    %75 = math.tanh %74 : vector<8x2xf32>
    %cst_23 = arith.constant dense<0.000000e+00> : vector<8xf32>
    %76 = vector.multi_reduction <add>, %75, %cst_23 [1] : vector<8x2xf32> to vector<8xf32>
    %77 = vector.shape_cast %76 : vector<8xf32> to vector<8x1xf32>
    %78 = arith.mulf %75, %75 : vector<8x2xf32>
    %cst_24 = arith.constant dense<0.000000e+00> : vector<8xf32>
    %79 = vector.multi_reduction <add>, %78, %cst_24 [1] : vector<8x2xf32> to vector<8xf32>
    %80 = vector.shape_cast %79 : vector<8xf32> to vector<8x1xf32>
    %cst_25 = arith.constant 5.000000e-01 : f32
    %81 = vector.broadcast %cst_25 : f32 to vector<8x1xf32>
    %82 = arith.mulf %77, %81 : vector<8x1xf32>
    %cst_26 = arith.constant 5.000000e-01 : f32
    %83 = vector.broadcast %cst_26 : f32 to vector<8x1xf32>
    %84 = arith.mulf %80, %83 : vector<8x1xf32>
    %85 = arith.mulf %82, %82 : vector<8x1xf32>
    %86 = arith.subf %84, %85 : vector<8x1xf32>
    %cst_27 = arith.constant 0.000000e+00 : f32
    %87 = vector.broadcast %cst_27 : f32 to vector<8x1xf32>
    %88 = arith.maximumf %86, %87 : vector<8x1xf32>
    %cst_28 = arith.constant 9.99999974E-6 : f32
    %89 = vector.broadcast %cst_28 : f32 to vector<8x1xf32>
    %90 = arith.addf %88, %89 : vector<8x1xf32>
    %91 = math.rsqrt %90 : vector<8x1xf32>
    %92 = vector.broadcast %82 : vector<8x1xf32> to vector<8x2xf32>
    %93 = arith.subf %75, %92 : vector<8x2xf32>
    %94 = vector.broadcast %91 : vector<8x1xf32> to vector<8x2xf32>
    %95 = arith.mulf %93, %94 : vector<8x2xf32>
    %96 = vector.broadcast %12 : vector<1x2xf32> to vector<8x2xf32>
    %97 = arith.mulf %95, %96 : vector<8x2xf32>
    %98 = vector.broadcast %13 : vector<1x2xf32> to vector<8x2xf32>
    %99 = arith.addf %97, %98 : vector<8x2xf32>
    %c0_29 = arith.constant 0 : index
    %c0_30 = arith.constant 0 : index
    %100 = vector.load %arg4[%c0_29, %c0_30] : memref<8x2xf32, #tpu.memory_space<vmem>>, vector<8x2xf32>
    tpu.vector_store %arg4[%c0_29, %c0_30], %99 {strides = array<i32>} : memref<8x2xf32, #tpu.memory_space<vmem>>, vector<8x2xf32>,
    return
  }
  func.func @transform_0(%arg0: i32) -> (i32, i32) {
    %c0_i32 = arith.constant 0 : i32
    %c0_i32_0 = arith.constant 0 : i32
    return %arg0, %c0_i32 : i32, i32
  }
  func.func @transform_1(%arg0: i32) -> (i32, i32) {
    %c0_i32 = arith.constant 0 : i32
    %c0_i32_0 = arith.constant 0 : i32
    %c0_i32_1 = arith.constant 0 : i32
    return %c0_i32, %c0_i32_0 : i32, i32
  }
  func.func @transform_2(%arg0: i32) -> (i32, i32) {
    %c0_i32 = arith.constant 0 : i32
    %c0_i32_0 = arith.constant 0 : i32
    %c0_i32_1 = arith.constant 0 : i32
    return %c0_i32, %c0_i32_0 : i32, i32
  }
  func.func @transform_3(%arg0: i32) -> (i32, i32) {
    %c0_i32 = arith.constant 0 : i32
    %c0_i32_0 = arith.constant 0 : i32
    return %arg0, %c0_i32 : i32, i32
  }
}

</mosaic_0001>

<bundles_post_ra>
// kernel: tpu_custom_call.1
= control target key start
LH: loop header
LB: loop body
LE: loop exit
PB: predicated region body
PF: predicated region fallthrough
CT: control target
= control target key end

     0   :  { %v445_v0 = vmov 0.0|0.0   ;;  %vm446_vm0 = vmmov 0   ;;  %v447_v3 = vmov 0.0   ;;  %vm36_vm1 = vcmask 195584   ;;  %s565_s1 = inlined_call_operand.vmem [shape: f32[120,64], index: 1, kind: input, shape index: {}]   ;;  %s566_s0 = inlined_call_operand.vmem [shape: f32[8,24], index: 0, kind: input, shape index: {}]   ;;  %s567_s2 = inlined_call_operand.vmem [shape: f32[16,64], index: 2, kind: input, shape index: {}]   ;;  %s568_s3 = inlined_call_operand.vmem [shape: f32[8,2], index: 3, kind: output, shape index: {}]  }
   0x1   :  { %413 = vmatprep.subr.bf16.mxu0 %v445_v0  ;;  %v15_v1 = vld [vmem:[%s565_s1] sm:$0xff]  ;;  %v16_v2 = vld [vmem:[%s565_s1 + $0x8] sm:$0xff]  ;;  %380 = vmatprep.mubr.msk.f32.mxu0 %vm446_vm0, %v447_v3  ;;  %v17_v5 = vld [vmem:[%s565_s1 + $0x10] sm:$0xff]  ;;  %v32_v7 = vlaneseq  ;;  %vm111_vm2 = vcmask 523264   ;;  %vm216_vm3 = vcmask 261120   ;;  %vm321_vm4 = vcmask 15360  }
   0x2   :  { %v414_v4 = vpack.c.bf16 %v16_v2, %v15_v1  ;;  %416 = vmatprep.subr.bf16.mxu1 %v445_v0  ;;  %399 = vmatprep.mubr.msk.f32.mxu1 %vm446_vm0, %v447_v3  ;;  %v14_v6 = vld [vmem:[%s566_s0] sm:$0xff]  ;;  %v18_v19 = vld [vmem:[%s565_s1 + $0x18] sm:$0xff]  ;;  %v20_v22 = vld [vmem:[%s565_s1 + $0x28] sm:$0xff] }
   0x3   :  { %v483_v8 = vshrl.u32 %v32_v7, 7  ;;  %v489_v10 = vld [vmem:[%s567_s2] sm:$0xff]  ;;  %v21_v23 = vld [vmem:[%s565_s1 + $0x30] sm:$0xff]  ;;  %v22_v25 = vld [vmem:[%s565_s1 + $0x38] sm:$0xff] }
   0x4   :  { %415 = vmatpush3.bf16.msra.mxu0 %v414_v4  ;;  %v19_v20 = vld [vmem:[%s565_s1 + $0x20] sm:$0xff]  ;;  %v420_v24 = vpack.c.bf16 %v21_v23, %v20_v22  ;;  %v24_v28 = vld [vmem:[%s565_s1 + $0x48] sm:$0xff]  ;;  %v25_v29 = vld [vmem:[%s565_s1 + $0x50] sm:$0xff] }
   0x5   :  { %378 = vmatprep.subr.mxu0 %v447_v3  ;;  %v34_v9 = vsub.s32 0, %v483_v8  ;;  %v417_v21 = vpack.c.bf16 %v19_v20, %v18_v19  ;;  %v23_v26 = vld [vmem:[%s565_s1 + $0x40] sm:$0xff]  ;;  %v426_v30 = vpack.c.bf16 %v25_v29, %v24_v28  ;;  %v130_v39 = vsub.s32 1, %v483_v8  ;;  %v26_v57 = vld [vmem:[%s565_s1 + $0x58] sm:$0xff]  ;;  %v28_v60 = vld [vmem:[%s565_s1 + $0x68] sm:$0xff] }
   0x6   :  { %v423_v27 = vpack.c.bf16 %v23_v26, %v22_v25  ;;  %v135_v40 = vsub.s32 2, %v483_v8  ;;  %v140_v48 = vsub.s32 3, %v483_v8  ;;  %v27_v58 = vld [vmem:[%s565_s1 + $0x60] sm:$0xff]  ;;  %v29_v61 = vld [vmem:[%s565_s1 + $0x70] sm:$0xff]  ;;  %v245_v19 = vsub.s32 6, %v483_v8 }
   0x7   :  { %v35_v11 = vrot.slane %v489_v10, %v34_v9  ;;  %418 = vmatpush3.bf16.msra.mxu1 %v417_v21  ;;  %v131_v42 = vrot.slane %v489_v10, %v130_v39  ;;  %v429_v59 = vpack.c.bf16 %v27_v58, %v26_v57  ;;  %v432_v62 = vpack.c.bf16 %v29_v61, %v28_v60 }
   0x8   :  { %379 = vmatpush3.msra.mxu0 %v17_v5  ;;  %419 = vmatprep.subr.bf16.mxu1 %v445_v0  ;;  %v136_v45 = vrot.slane %v489_v10, %v135_v40  ;;  %v141_v49 = vrot.slane %v489_v10, %v140_v48  ;;  %v246_v20 = vrot.slane %v489_v10, %v245_v19 }
   0x9   :  { %381 = vmatmul.mubr.msk.f32.vlgmr.msra.gmra.mrb[0].mxu0 %vm36_vm1, %v14_v6  ;;  %428 = vmatprep.subr.bf16.mxu0 %v445_v0 }
   0xa   :  { %410 = vmatprep.mubr.msk.f32.mxu0 %vm446_vm0, %v447_v3  ;;  %430 = vmatpush3.bf16.msra.mxu0 %v429_v59 }
   0xb   :  { %421 = vmatpush3.bf16.msra.mxu1 %v420_v24  ;;  %431 = vmatprep.subr.bf16.mxu0 %v445_v0 }
   0xc   :  { %422 = vmatprep.subr.bf16.mxu1 %v445_v0 }
   0xe   :  { %433 = vmatpush3.bf16.msra.mxu0 %v432_v62 }
   0xf   :  { %424 = vmatpush3.bf16.msra.mxu1 %v423_v27 }
  0x10   :  { %425 = vmatprep.subr.bf16.mxu1 %v445_v0  ;;  %v235_v0 = vsub.s32 4, %v483_v8 }
  0x13   :  { %427 = vmatpush3.bf16.msra.mxu1 %v426_v30 }
  0xdc   :  { %v106_v12 = vpop.f32.mrb[0].mxu0 }
  0xdd   :  { %v107_v13 = vadd.f32 %v106_v12, %v35_v11  ;;  %v382_v14 = vpop.f32.mrb[1].mxu0  ;;  %v240_v11 = vsub.s32 5, %v483_v8 }
  0xdf   :  { %v110_v15 = vmax.f32 %v107_v13, 0.0  ;;  %v236_v13 = vrot.slane %v489_v10, %v235_v0 }
  0xe1   :  { %v112_v16 = vsel %vm111_vm2, %v110_v15, 0.0  ;;  %v115_v17 = vmul.f32 %v110_v15, %v110_v15 }
  0xe2   :  { %113 = vadd.xlane.f32.xlu0 %v112_v16  ;;  %v241_v16 = vrot.slane %v489_v10, %v240_v11 }
  0xe3   :  { %v116_v18 = vsel %vm111_vm2, %v115_v17, 0.0 }
  0xe6   :  { %117 = vadd.xlane.f32.xlu0 %v116_v18 }
 0x16f   :  { %v114_v31 = vpop.xlane.xlu0 %113 }
 0x170   :  { %v119_v32 = vmul.f32 0.015625, %v114_v31 }
 0x172   :  { %v121_v34 = vmul.f32 %v119_v32, %v119_v32  ;;  %v126_v41 = vsub.f32 %v110_v15, %v119_v32 }
 0x173   :  { %v118_v33 = vpop.xlane.xlu0 %117 }
 0x174   :  { %v120_v35 = vmul.f32 0.015625, %v118_v33 }
 0x176   :  { %v122_v36 = vsub.f32 %v120_v35, %v121_v34 }
 0x178   :  { %v123_v37 = vmax.f32 %v122_v36, 0.0  ;;  %v340_v36 = vsub.s32 7, %v483_v8 }
 0x17a   :  { %v124_v38 = vadd.f32 1e-05, %v123_v37  ;;  %v31_v37 = vld [vmem:[%s567_s2 + $0x8] sm:$0xff]  ;;  %v341_v39 = vrot.slane %v489_v10, %v340_v36 }
 0x17c   :  { %437 = vrsqrt.f32 %v124_v38 }
 0x186   :  { %v438_v43 = vpop.eup %437 }
 0x187   :  { %v127_v44 = vmul.f32 %v438_v43, %v126_v41  ;;  %v346_v41 = vrot.slane %v31_v37, %v34_v9 }
 0x189   :  { %v132_v46 = vmul.f32 %v131_v42, %v127_v44 }
 0x18b   :  { %v137_v47 = vadd.f32 %v136_v45, %v132_v46 }
 0x18d   :  { %400 = vmatmul.mubr.msk.f32.vlgmr.msra.gmra.mrb[0].mxu1 %vm111_vm2, %v137_v47 }
 0x260   :  { %v211_v50 = vpop.f32.mrb[0].mxu1 }
 0x261   :  { %v212_v51 = vadd.f32 %v211_v50, %v141_v49  ;;  %v401_v52 = vpop.f32.mrb[1].mxu1 }
 0x263   :  { %v215_v53 = vmax.f32 %v212_v51, 0.0 }
 0x265   :  { %v217_v54 = vsel %vm216_vm3, %v215_v53, 0.0  ;;  %v220_v55 = vmul.f32 %v215_v53, %v215_v53 }
 0x266   :  { %218 = vadd.xlane.f32.xlu1 %v217_v54 }
 0x267   :  { %v221_v56 = vsel %vm216_vm3, %v220_v55, 0.0 }
 0x26a   :  { %222 = vadd.xlane.f32.xlu1 %v221_v56 }
 0x2f3   :  { %v219_v63 = vpop.xlane.xlu1 %218 }
 0x2f4   :  { %v224_v1 = vmul.f32 0.03125, %v219_v63 }
 0x2f6   :  { %v226_v3 = vmul.f32 %v224_v1, %v224_v1  ;;  %v231_v12 = vsub.f32 %v215_v53, %v224_v1 }
 0x2f7   :  { %v223_v2 = vpop.xlane.xlu1 %222 }
 0x2f8   :  { %v225_v4 = vmul.f32 0.03125, %v223_v2 }
 0x2fa   :  { %v227_v5 = vsub.f32 %v225_v4, %v226_v3 }
 0x2fc   :  { %v228_v6 = vmax.f32 %v227_v5, 0.0 }
 0x2fe   :  { %v229_v7 = vadd.f32 1e-05, %v228_v6 }
 0x300   :  { %439 = vrsqrt.f32 %v229_v7 }
 0x30a   :  { %v440_v14 = vpop.eup %439 }
 0x30b   :  { %v232_v15 = vmul.f32 %v440_v14, %v231_v12 }
 0x30d   :  { %v237_v17 = vmul.f32 %v236_v13, %v232_v15 }
 0x30f   :  { %v242_v18 = vadd.f32 %v241_v16, %v237_v17 }
 0x311   :  { %411 = vmatmul.mubr.msk.f32.vlgmr.msra.gmra.mrb[2].mxu0 %vm216_vm3, %v242_v18 }
 0x3e4   :  { %v316_v21 = vpop.f32.mrb[2].mxu0 }
 0x3e5   :  { %v317_v22 = vadd.f32 %v316_v21, %v246_v20  ;;  %v412_v23 = vpop.f32.mrb[3].mxu0 }
 0x3e7   :  { %441 = vtanh.f32 %v317_v22 }
 0x3f1   :  { %v442_v24 = vpop.eup %441 }
 0x3f2   :  { %v322_v25 = vsel %vm321_vm4, %v442_v24, 0.0  ;;  %v325_v26 = vmul.f32 %v442_v24, %v442_v24 }
 0x3f3   :  { %323 = vadd.xlane.f32.xlu0 %v322_v25 }
 0x3f4   :  { %v326_v27 = vsel %vm321_vm4, %v325_v26, 0.0 }
 0x3f5   :  { %327 = vadd.xlane.f32.xlu1 %v326_v27 }
 0x480   :  { %v324_v28 = vpop.xlane.xlu0 %323 }
 0x481   :  { %v329_v29 = vmul.f32 0.5, %v324_v28 }
 0x482   :  { %v328_v30 = vpop.xlane.xlu1 %327 }
 0x483   :  { %v331_v31 = vmul.f32 %v329_v29, %v329_v29  ;;  %v330_v32 = vmul.f32 0.5, %v328_v30  ;;  %v336_v38 = vsub.f32 %v442_v24, %v329_v29 }
 0x485   :  { %v332_v33 = vsub.f32 %v330_v32, %v331_v31 }
 0x487   :  { %v333_v34 = vmax.f32 %v332_v33, 0.0 }
 0x489   :  { %v334_v35 = vadd.f32 1e-05, %v333_v34 }
 0x48b   :  { %443 = vrsqrt.f32 %v334_v35 }
 0x495   :  { %v444_v40 = vpop.eup %443 }
 0x496   :  { %v337_v42 = vmul.f32 %v444_v40, %v336_v38 }
 0x498   :  { %v342_v43 = vmul.f32 %v341_v39, %v337_v42 }
 0x49a   :  { %v347_v44 = vadd.f32 %v346_v41, %v342_v43 }
 0x49c   :  { %348 = vst.msk [vmem:[%s568_s3] sm:$0xff] %vm321_vm4, %v347_v44 }

</bundles_post_ra>
